<compile_context>
chip_gen: v7x
topology: tpu7x:2x2x1
jax: 0.10.0
libtpu: 0.0.40
codegen_flags: <defaults>
</compile_context>

<pallas_src>
import functools

import jax
import jax.numpy as jnp
from jax.experimental import pallas as pl
from jax.experimental.pallas import tpu as pltpu

_LANES = 128


def _min_block_rows(*dtypes) -> int:
    # Native sublane tile: 8 rows (4-byte), 16 rows (2-byte), 32 rows (1-byte).
    itemsize = min(jnp.dtype(d).itemsize for d in dtypes)
    return 8 * max(1, 4 // itemsize)


def _make_metric_sums_kernel(block_rows: int, sub: int):
    """One grid step: accumulate the four partial sums of a (block_rows, 128) tile.

    The tile is consumed in a single register-resident pass: a fori_loop over
    `sub`-row sub-chunks keeps four (sub, 128) f32 accumulators in vregs, so
    each element pair is loaded from VMEM exactly once and nothing tile-sized
    is stored back.
    """
    nsub = block_rows // sub
    unroll = min(8, nsub)

    def kernel(p_ref, t_ref, out_ref):
        @pl.when(pl.program_id(0) == 0)
        def _init():
            out_ref[...] = jnp.zeros_like(out_ref)

        def body(j, carry):
            sse, sae, st, st2 = carry
            r0 = pl.multiple_of(j * sub, sub)
            p = p_ref[pl.ds(r0, sub), :].astype(jnp.float32)
            t = t_ref[pl.ds(r0, sub), :].astype(jnp.float32)
            d = p - t
            return (sse + d * d, sae + jnp.abs(d), st + t, st2 + t * t)

        zero = jnp.zeros((sub, _LANES), jnp.float32)
        sse, sae, st, st2 = jax.lax.fori_loop(
            0, nsub, body, (zero, zero, zero, zero), unroll=unroll)

        # Lane-wide partials into the resident (4, 128) output block (VMEM RMW
        # only; HBM writeback happens once at the end of the grid).
        out_ref[0:1, :] += jnp.sum(sse, axis=0, keepdims=True)
        out_ref[1:2, :] += jnp.sum(sae, axis=0, keepdims=True)
        out_ref[2:3, :] += jnp.sum(st, axis=0, keepdims=True)
        out_ref[3:4, :] += jnp.sum(st2, axis=0, keepdims=True)

    return kernel


def _partial_sums_flat(p, t):
    """(sse, sae, st, st2) as a (4,) f32 array — plain jnp (tiny inputs / tails)."""
    p = p.astype(jnp.float32)
    t = t.astype(jnp.float32)
    d = p - t
    return jnp.stack(
        [jnp.sum(d * d), jnp.sum(jnp.abs(d)), jnp.sum(t), jnp.sum(t * t)])


_metric_sums_jnp = jax.jit(_partial_sums_flat)


@functools.partial(jax.jit, static_argnames=("block_rows",))
def _metric_sums_pallas(y_pred, y_true, *, block_rows):
    total = y_pred.size
    p = y_pred.reshape(-1)
    t = y_true.reshape(-1)

    # Lane-dense (rows, 128) view. Pad only in the rare ragged-lane case
    # (<=127 zeros, mathematically inert for all four sums); aligned inputs
    # reshape for free with no HBM copy.
    lane_pad = (-total) % _LANES
    if lane_pad:
        p = jnp.concatenate([p, jnp.zeros((lane_pad,), p.dtype)])
        t = jnp.concatenate([t, jnp.zeros((lane_pad,), t.dtype)])
    rows = (total + lane_pad) // _LANES
    p2 = p.reshape(rows, _LANES)
    t2 = t.reshape(rows, _LANES)

    # Tiling: block depth a multiple of the native sublane tile of the input
    # dtypes (8 rows f32, 16 rows bf16).
    sub = _min_block_rows(y_pred.dtype, y_true.dtype)
    br = max(sub, (block_rows // sub) * sub)
    num_full = rows // br
    if num_full == 0:
        # Not even one full tile: a single fused jnp pass is already optimal.
        return _partial_sums_flat(p2, t2)

    kernel = _make_metric_sums_kernel(br, sub)
    in_spec = pl.BlockSpec((br, _LANES), lambda i: (i, 0))
    partial = pl.pallas_call(
        kernel,
        out_shape=jax.ShapeDtypeStruct((4, _LANES), jnp.float32),
        grid_spec=pltpu.PrefetchScalarGridSpec(
            num_scalar_prefetch=0,
            grid=(num_full,),                 # only the fully-covered tiles
            in_specs=[in_spec, in_spec],
            out_specs=pl.BlockSpec((4, _LANES), lambda i: (0, 0)),
        ),
        compiler_params=pltpu.CompilerParams(
            dimension_semantics=("arbitrary",),      # reduction axis
            vmem_limit_bytes=48 * 1024 * 1024,       # headroom below v7x 64 MiB
        ),
    )(p2, t2)

    sums = jnp.sum(partial, axis=1)  # final cross-lane reduce: tiny, plain JAX

    # Ragged row tail (< br rows, includes any lane-pad zeros): cheap fused
    # jnp reduction over a small suffix slice — no full-array copy, no OOB DMA.
    tail_start = num_full * br
    if tail_start < rows:
        sums = sums + _partial_sums_flat(p2[tail_start:, :], t2[tail_start:, :])
    return sums


class RegressionMetricCalc:
    """JAX/Pallas equivalent of the PyTorch RegressionMetricCalc module.

    num_outputs=1 (the module default). No learnable parameters.
    Inputs may be f32 or bf16; the kernel upcasts to f32 internally, so callers
    should NOT pre-cast bf16 data (halves HBM traffic on this mem-bound op).
    """

    def __init__(self, num_outputs: int = 1, *,
                 min_pallas_elems: int = 65536, block_rows: int = 8192):
        assert num_outputs == 1, "kernel instantiated for the default num_outputs=1"
        self.num_outputs = num_outputs
        self.min_pallas_elems = min_pallas_elems
        self.block_rows = block_rows

    def __call__(self, y_pred: jax.Array, y_true: jax.Array, step_type: str) -> dict:
        if y_pred.ndim == 1:
            y_pred = y_pred[:, None]
        if y_true.ndim == 1:
            y_true = y_true[:, None]

        n_obs = y_true.shape[0]   # observations per output (ss_tot denominator)
        n_total = y_true.size     # total elements (MAE denominator)

        if n_total < self.min_pallas_elems:
            sums = _metric_sums_jnp(y_pred, y_true)
        else:
            sums = _metric_sums_pallas(y_pred, y_true, block_rows=self.block_rows)
        sse, sae, st, st2 = sums[0], sums[1], sums[2], sums[3]

        # torchmetrics semantics (num_outputs=1, single-batch forward()):
        #   RelativeSquaredError (squared=True): sse / sum((t - mean(t))^2)
        #   R2Score:                             1 - sse / sum((t - mean(t))^2)
        #   MeanAbsoluteError:                   sae / n_total
        n_obs_f = jnp.float32(n_obs)
        ss_tot = st2 - (st * st) / n_obs_f
        rse = sse / ss_tot
        r2 = 1.0 - sse / ss_tot
        mae = sae / jnp.float32(n_total)

        return {
            step_type + "_RMSE": rse,  # module names it RMSE but uses RelativeSquaredError
            step_type + "_R2": r2,
            step_type + "_MAE": mae,
        }


if __name__ == "__main__":
    key = jax.random.PRNGKey(0)
    k1, k2, k3, k4, k5, k6 = jax.random.split(key, 6)

    def reference(p, t):
        p = p.astype(jnp.float32)
        t = t.astype(jnp.float32)
        ss_res = jnp.sum((p - t) ** 2)
        ss_tot = jnp.sum((t - jnp.mean(t)) ** 2)
        return {"RMSE": ss_res / ss_tot,
                "R2": 1.0 - ss_res / ss_tot,
                "MAE": jnp.mean(jnp.abs(p - t))}

    def check(metrics, ref, prefix, rtol, atol):
        for k, v in ref.items():
            got = metrics[prefix + "_" + k]
            assert jnp.allclose(got, v, rtol=rtol, atol=atol), (k, got, v)

    # --- Check 1: lane-aligned f32, multi-step grid accumulation, no pad/tail
    N1 = 2048
    t1 = jax.random.normal(k1, (N1, 1), dtype=jnp.float32)
    p1 = t1 + 0.1 * jax.random.normal(k2, (N1, 1), dtype=jnp.float32)
    calc1 = RegressionMetricCalc(num_outputs=1, min_pallas_elems=0, block_rows=8)
    m1 = {k: jax.block_until_ready(v) for k, v in calc1(p1, t1, "val").items()}
    check(m1, reference(p1, t1), "val", 1e-5, 1e-6)

    # --- Check 2: ragged size + bf16 inputs (<=127-elem lane pad, bf16 packing,
    #              ragged row tail handled outside the kernel)
    N2 = 5000
    t2 = jax.random.normal(k3, (N2, 1), dtype=jnp.float32)
    p2 = t2 + 0.25 * jax.random.normal(k4, (N2, 1), dtype=jnp.float32)
    t2b, p2b = t2.astype(jnp.bfloat16), p2.astype(jnp.bfloat16)
    calc2 = RegressionMetricCalc(num_outputs=1, min_pallas_elems=0, block_rows=32)
    m2 = {k: jax.block_until_ready(v) for k, v in calc2(p2b, t2b, "test").items()}
    check(m2, reference(p2b, t2b), "test", 1e-3, 1e-4)

    # --- Check 3: aligned f32 with a ragged row tail (rows not multiple of br)
    N3 = 13 * 128
    t3 = jax.random.normal(k5, (N3, 1), dtype=jnp.float32)
    p3 = t3 + 0.05 * jax.random.normal(k6, (N3, 1), dtype=jnp.float32)
    calc3 = RegressionMetricCalc(num_outputs=1, min_pallas_elems=0, block_rows=8)
    m3 = {k: jax.block_until_ready(v) for k, v in calc3(p3, t3, "train").items()}
    check(m3, reference(p3, t3), "train", 1e-5, 1e-6)

    print("KERNEL_OK")
</pallas_src>

<mosaic_0001>
module attributes {stable_mosaic.version = 11 : i64} {
  func.func @kernel(%arg0: i32, %arg1: memref<8x128xf32, #tpu.memory_space<vmem>>, %arg2: memref<8x128xf32, #tpu.memory_space<vmem>>, %arg3: memref<4x128xf32, #tpu.memory_space<vmem>>) attributes {dimension_semantics = [#tpu.dimension_semantics<arbitrary>], iteration_bounds = array<i64: 2>, scalar_prefetch = 0 : i64, scratch_operands = 0 : i64, tpu.core_type = #tpu.core_type<tc>, window_params = [{transform_indices = @transform_0, window_bounds = array<i64: 8, 128>}, {transform_indices = @transform_1, window_bounds = array<i64: 8, 128>}, {pipeline_mode = #tpu.pipeline_mode<synchronous>, transform_indices = @transform_2, window_bounds = array<i64: 4, 128>}]} {
    %c0_i32 = arith.constant 0 : i32
    %0 = arith.cmpi eq, %arg0, %c0_i32 : i32
    %1 = arith.extui %0 : i1 to i32
    %c0_i32_0 = arith.constant 0 : i32
    %2 = arith.cmpi ne, %1, %c0_i32_0 : i32
    scf.if %2 {
      %cst_20 = arith.constant 0.000000e+00 : f32
      %38 = vector.broadcast %cst_20 : f32 to vector<4x128xf32>
      %c0_21 = arith.constant 0 : index
      %c0_22 = arith.constant 0 : index
      %39 = vector.load %arg3[%c0_21, %c0_22] : memref<4x128xf32, #tpu.memory_space<vmem>>, vector<4x128xf32>
      tpu.vector_store %arg3[%c0_21, %c0_22], %38 {strides = array<i32>} : memref<4x128xf32, #tpu.memory_space<vmem>>, vector<4x128xf32>,
    } else {
    }
    %cst = arith.constant 0.000000e+00 : f32
    %3 = vector.broadcast %cst : f32 to vector<8x128xf32>
    %c0_i32_1 = arith.constant 0 : i32
    %c8_i32 = arith.constant 8 : i32
    %4 = arith.muli %c0_i32_1, %c8_i32 : i32
    %5 = tpu.assume_multiple %4, 8 : i32
    %6 = arith.index_cast %5 : i32 to index
    %c0 = arith.constant 0 : index
    %7 = vector.load %arg1[%6, %c0] : memref<8x128xf32, #tpu.memory_space<vmem>>, vector<8x128xf32>
    %8 = arith.index_cast %5 : i32 to index
    %c0_2 = arith.constant 0 : index
    %9 = vector.load %arg2[%8, %c0_2] : memref<8x128xf32, #tpu.memory_space<vmem>>, vector<8x128xf32>
    %10 = arith.subf %7, %9 : vector<8x128xf32>
    %11 = arith.mulf %10, %10 : vector<8x128xf32>
    %12 = arith.addf %3, %11 : vector<8x128xf32>
    %13 = math.absf %10 : vector<8x128xf32>
    %14 = arith.addf %3, %13 : vector<8x128xf32>
    %15 = arith.addf %3, %9 : vector<8x128xf32>
    %16 = arith.mulf %9, %9 : vector<8x128xf32>
    %17 = arith.addf %3, %16 : vector<8x128xf32>
    %c1_i32 = arith.constant 1 : i32
    %c0_3 = arith.constant 0 : index
    %c0_4 = arith.constant 0 : index
    %18 = vector.load %arg3[%c0_3, %c0_4] : memref<4x128xf32, #tpu.memory_space<vmem>>, vector<1x128xf32>
    %cst_5 = arith.constant dense<0.000000e+00> : vector<128xf32>
    %19 = vector.multi_reduction <add>, %12, %cst_5 [0] : vector<8x128xf32> to vector<128xf32>
    %20 = vector.shape_cast %19 : vector<128xf32> to vector<1x128xf32>
    %21 = arith.addf %18, %20 : vector<1x128xf32>
    %c0_6 = arith.constant 0 : index
    %c0_7 = arith.constant 0 : index
    %22 = vector.load %arg3[%c0_6, %c0_7] : memref<4x128xf32, #tpu.memory_space<vmem>>, vector<1x128xf32>
    tpu.vector_store %arg3[%c0_6, %c0_7], %21 {strides = array<i32>} : memref<4x128xf32, #tpu.memory_space<vmem>>, vector<1x128xf32>,
    %c1 = arith.constant 1 : index
    %c0_8 = arith.constant 0 : index
    %23 = vector.load %arg3[%c1, %c0_8] : memref<4x128xf32, #tpu.memory_space<vmem>>, vector<1x128xf32>
    %cst_9 = arith.constant dense<0.000000e+00> : vector<128xf32>
    %24 = vector.multi_reduction <add>, %14, %cst_9 [0] : vector<8x128xf32> to vector<128xf32>
    %25 = vector.shape_cast %24 : vector<128xf32> to vector<1x128xf32>
    %26 = arith.addf %23, %25 : vector<1x128xf32>
    %c1_10 = arith.constant 1 : index
    %c0_11 = arith.constant 0 : index
    %27 = vector.load %arg3[%c1_10, %c0_11] : memref<4x128xf32, #tpu.memory_space<vmem>>, vector<1x128xf32>
    tpu.vector_store %arg3[%c1_10, %c0_11], %26 {strides = array<i32>} : memref<4x128xf32, #tpu.memory_space<vmem>>, vector<1x128xf32>,
    %c2 = arith.constant 2 : index
    %c0_12 = arith.constant 0 : index
    %28 = vector.load %arg3[%c2, %c0_12] : memref<4x128xf32, #tpu.memory_space<vmem>>, vector<1x128xf32>
    %cst_13 = arith.constant dense<0.000000e+00> : vector<128xf32>
    %29 = vector.multi_reduction <add>, %15, %cst_13 [0] : vector<8x128xf32> to vector<128xf32>
    %30 = vector.shape_cast %29 : vector<128xf32> to vector<1x128xf32>
    %31 = arith.addf %28, %30 : vector<1x128xf32>
    %c2_14 = arith.constant 2 : index
    %c0_15 = arith.constant 0 : index
    %32 = vector.load %arg3[%c2_14, %c0_15] : memref<4x128xf32, #tpu.memory_space<vmem>>, vector<1x128xf32>
    tpu.vector_store %arg3[%c2_14, %c0_15], %31 {strides = array<i32>} : memref<4x128xf32, #tpu.memory_space<vmem>>, vector<1x128xf32>,
    %c3 = arith.constant 3 : index
    %c0_16 = arith.constant 0 : index
    %33 = vector.load %arg3[%c3, %c0_16] : memref<4x128xf32, #tpu.memory_space<vmem>>, vector<1x128xf32>
    %cst_17 = arith.constant dense<0.000000e+00> : vector<128xf32>
    %34 = vector.multi_reduction <add>, %17, %cst_17 [0] : vector<8x128xf32> to vector<128xf32>
    %35 = vector.shape_cast %34 : vector<128xf32> to vector<1x128xf32>
    %36 = arith.addf %33, %35 : vector<1x128xf32>
    %c3_18 = arith.constant 3 : index
    %c0_19 = arith.constant 0 : index
    %37 = vector.load %arg3[%c3_18, %c0_19] : memref<4x128xf32, #tpu.memory_space<vmem>>, vector<1x128xf32>
    tpu.vector_store %arg3[%c3_18, %c0_19], %36 {strides = array<i32>} : memref<4x128xf32, #tpu.memory_space<vmem>>, vector<1x128xf32>,
    return
  }
  func.func @transform_0(%arg0: i32) -> (i32, i32) {
    %c0_i32 = arith.constant 0 : i32
    %c0_i32_0 = arith.constant 0 : i32
    return %arg0, %c0_i32 : i32, i32
  }
  func.func @transform_1(%arg0: i32) -> (i32, i32) {
    %c0_i32 = arith.constant 0 : i32
    %c0_i32_0 = arith.constant 0 : i32
    return %arg0, %c0_i32 : i32, i32
  }
  func.func @transform_2(%arg0: i32) -> (i32, i32) {
    %c0_i32 = arith.constant 0 : i32
    %c0_i32_0 = arith.constant 0 : i32
    %c0_i32_1 = arith.constant 0 : i32
    return %c0_i32, %c0_i32_0 : i32, i32
  }
}

</mosaic_0001>

<bundles_post_ra>
// kernel: _metric_sums_pallas.1
= control target key start
LH: loop header
LB: loop body
LE: loop exit
PB: predicated region body
PF: predicated region fallthrough
CT: control target
= control target key end

     0   :  { %7 = vsyncpa [#allocation3], 0  ;;  %s649_s0 = inlined_call_operand.hbm [shape: f32[16,128], index: 0, kind: input, shape index: {}]   ;;  %s650_s1 = inlined_call_operand.hbm [shape: f32[16,128], index: 1, kind: input, shape index: {}]   ;;  %s651_s2 = inlined_call_operand.vmem [shape: f32[4,128], index: 2, kind: output, shape index: {}]  }
   0x1   :  { %9 = vsyncpa [#allocation3 + $0x1], 0 }
   0x2   :  { %10 = vsyncpa [#allocation5], 0 }
   0x3   :  { %12 = vsyncpa [#allocation5 + $0x1], 0  ;;  %s472_s9 = smov 0   ;;  %s474_s10 = smov 0  }
   0x4   :  { %s476_s11 = smov 0   ;;  %s478_s12 = smov 0  }
   0x5 LB: > { %s296_s13 = sadd.s32 4294967295, %s452_s12   ;;  %s492_s14 = sadd.s32 1, %s452_s12   ;;  %s452_s12 = sphi %s478_s12, %s663_s12   ;;  %s448_s11 = sphi %s476_s11, %s662_s11   ;;  %s444_s10 = sphi %s474_s10, %s661_s10   ;;  %s440_s9 = sphi %s472_s9, %s660_s9  }
   0x6   : > { %s22_s15 = ssub.s32 %s452_s12, %s492_s14  ;;  %s25_s16 = sadd.s32 1, %s448_s11 }
   0x7   : > { %p23_p0 = scmp.eq.s32.totalorder %s22_s15, 0  ;;  %p32_p1 = scmp.ne.s32.totalorder %s448_s11, %s444_s10 }
   0x8   : > { %p33_p2 = scmp.eq.s32.totalorder %s452_s12, 0  ;;  %p38_p3 = scmp.ne.s32.totalorder %s444_s10, %s440_s9 }
   0x9   : > { %s502_s17 = scalar_select %p23_p0, %s448_s11, %s25_s16  }
   0xa   : > { %p34_p4 = por %p33_p2, %p32_p1  ;;  %p39_p5 = scmp.eq.s32.totalorder %s296_s13, 0 }
   0xb   : > { %p320_p6 = scmp.lt.s32.totalorder %s452_s12, 2  ;;  %s512_s19 = sand.u32 1, %s448_s11  }
   0xc   : > { %p507_p7 = por %p39_p5, %p38_p3  ;;  %s299_s20 = sshll.u32 %s512_s19, 3 }
   0xd   : > { %s300_s21 = sshll.u32 %s452_s12, 7  ;;  %s113_s25 = scalar_lea.vmem [#allocation2], %s299_s20 }
   0xe   : > { %s653_s18 = scalar_select %p507_p7, 1, 0 }
   0xf   : > { %s521_s24 = scalar_lea.hbm %s649_s0, %s300_s21  ;;  %s120_s26 = sshll.u32 %s113_s25, 4  ;;  %s525_s26 = int_to_ptr.vmem [resolvable:$true] %s120_s26 }
  0x10   : > { %p527_p8 = pnand %p320_p6, %p34_p4  ;;  %s110_s28 = scalar_lea.sflag [#allocation3], %s512_s19 }
  0x11   : > { %s354_s29 = scalar_lea.hbm %s521_s24, 128  ;;  %s359_s4 = scalar_lea.hbm %s649_s0, 256 }
  0x12   : > { %p355_p11 = scmp.ne.s32.totalorder %s521_s24, %s354_s29  ;;  %p356_p12 = pneg %p527_p8 }
  0x13   : > { %p360_p1 = scmp.lt.u32.totalorder %s521_s24, %s649_s0  ;;  %p361_p2 = scmp.lt.u32.totalorder %s359_s4, %s354_s29 }
  0x14   : > { %p357_p13 = pnand %p356_p12, %p355_p11  ;;  %p363_p4 = scmp.lt.u32.totalorder %s354_s29, %s521_s24 }
  0x15   : > { %p362_p3 = por %p361_p2, %p360_p1 }
  0x16   : > { %p358_p0 = pneg %p357_p13 }
  0x17   : > { %p364_p5 = por %p363_p4, %p362_p3 }
  0x19   : > { %p365_p6 = pnand %p364_p5, %p358_p0 }
  0x1b   : > { %368 = shalt.err (!%p365_p6)
}
  0x1c   : > { %s369_s7 = scalar_lea.vmem %s525_s26, 128  ;;  %s454_s8 = smov [#allocation2]  }
  0x1d   : > { %p370_p11 = scmp.ne.s32.totalorder %s525_s26, %s369_s7  ;;  %s374_s9 = sshll.u32 %s454_s8, 4  ;;  %s375_s9 = int_to_ptr.vmem [resolvable:$false] %s374_s9 }
  0x1e   : > { %s376_s15 = scalar_lea.vmem %s375_s9, 256  ;;  %p377_p10 = scmp.lt.s32.totalorder %s525_s26, %s375_s9 }
  0x1f   : > { %p372_p13 = pnand %p370_p11, %p356_p12  ;;  %p378_p1 = scmp.lt.s32.totalorder %s376_s15, %s369_s7 }
  0x21   : > { %p373_p9 = pneg %p372_p13  ;;  %p379_p2 = por %p378_p1, %p377_p10 }
  0x23   : > { %p380_p3 = pnand %p379_p2, %p373_p9 }
  0x25   : > { %383 = shalt.err (!%p380_p3)
}
  0x26   : > { %316 = dma.hbm_to_vmem [thread:$0]  (!%p527_p8), %s521_s24, 128, %s525_s26, %s110_s28  }
  0x27   : > { %p655_p0 = scmp.lt.s32.totalorder %s452_s12, 3  ;;  %p656_p4 = scmp.ge.s32.totalorder %s452_s12, 1 }
  0x28   : > { %s572_s25 = scalar_lea.hbm %s650_s1, %s300_s21  ;;  %s131_s29 = scalar_lea.vmem [#allocation4], %s299_s20 }
  0x29   : > { %p563_p5 = pnand %p656_p4, %p655_p0  ;;  %s138_s30 = sshll.u32 %s131_s29, 4  ;;  %s139_s30 = int_to_ptr.vmem [resolvable:$true] %s138_s30 }
  0x2a   : > { %s128_s24 = scalar_lea.sflag [#allocation5], %s512_s19  ;;  %s384_s26 = scalar_lea.hbm %s572_s25, 128 }
  0x2b   : > { %s657_s16 = scalar_select %p563_p5, 1, 0 }
  0x2c   : > { %p385_p9 = scmp.ne.s32.totalorder %s572_s25, %s384_s26  ;;  %s389_s21 = scalar_lea.hbm %s650_s1, 256 }
  0x2d   : > { %p390_p11 = scmp.lt.u32.totalorder %s572_s25, %s650_s1  ;;  %p391_p13 = scmp.lt.u32.totalorder %s389_s21, %s384_s26 }
  0x2e   : > { %p387_p10 = pnand %p385_p9, %p356_p12  ;;  %p393_p2 = scmp.lt.u32.totalorder %s384_s26, %s572_s25 }
  0x2f   : > { %p392_p1 = por %p391_p13, %p390_p11 }
  0x30   : > { %p388_p6 = pneg %p387_p10 }
  0x31   : > { %p394_p3 = por %p393_p2, %p392_p1 }
  0x33   : > { %p395_p0 = pnand %p394_p3, %p388_p6 }
  0x35   : > { %398 = shalt.err (!%p395_p0)
}
  0x36   : > { %s399_s19 = scalar_lea.vmem %s139_s30, 128  ;;  %s455_s20 = smov [#allocation4]  }
  0x37   : > { %p400_p4 = scmp.ne.s32.totalorder %s139_s30, %s399_s19  ;;  %s404_s6 = sshll.u32 %s455_s20, 4  ;;  %s405_s6 = int_to_ptr.vmem [resolvable:$false] %s404_s6 }
  0x38   : > { %s406_s7 = scalar_lea.vmem %s405_s6, 256  ;;  %p407_p7 = scmp.lt.s32.totalorder %s139_s30, %s405_s6 }
  0x39   : > { %p402_p9 = pnand %p400_p4, %p356_p12  ;;  %p408_p5 = scmp.lt.s32.totalorder %s406_s7, %s399_s19 }
  0x3b   : > { %p403_p10 = pneg %p402_p9  ;;  %p409_p11 = por %p408_p5, %p407_p7 }
  0x3d   : > { %p410_p13 = pnand %p409_p11, %p403_p10 }
  0x3f   : > { %413 = shalt.err (!%p410_p13)
}
  0x40   : > { %319 = dma.hbm_to_vmem [thread:$0]  (!%p527_p8), %s572_s25, 128, %s139_s30, %s128_s24  }
  0x41   : > { %p658_p6 = scmp.ne.s32.totalorder %s657_s16, 0 }
  0x42   : > { %s149_s8 = sand.u32 (!%p658_p6), 1, %s444_s10   ;;  %p659_p12 = scmp.ne.s32.totalorder (!%p658_p6), %s653_s18, 0 }
  0x43   : > { %147 = sbr.rel (%p658_p6) target bundleno = 106 (0x6a), region = 28  ;;  %s304_s9 = sshll.u32 (!%p658_p6), %s149_s8, 3 }
  0x44   : > { %s150_s15 = scalar_lea.sflag (!%p658_p6), [#allocation3], %s149_s8  ;;  %s153_s22 = scalar_lea.vmem (!%p658_p6), [#allocation2], %s304_s9 }
  0x4a   : > { %431 = dma.done.wait (%p659_p12), %s150_s15, 128  }
  0x4b   : > { %433 = vsyncadd (%p659_p12), %s150_s15, 4294967168  ;;  %s159_s23 = scalar_lea.sflag [#allocation5], %s149_s8  ;;  %s162_s29 = scalar_lea.vmem [#allocation4], %s304_s9 }
  0x4c   : > { %435 = dma.done.wait (%p659_p12), %s159_s23, 128  }
  0x4d   : > { %437 = vsyncadd (%p659_p12), %s159_s23, 4294967168  ;;  %p306_p7 = scmp.ne.s32.totalorder %s296_s13, 0 }
  0x4e   : > { %v456_v0 = vmov (!%p306_p7), 0.0  }
  0x4f   : > { %186 = sbr.rel (%p306_p7) target bundleno = 86 (0x56), region = 40  ;;  %187 = vst [vmem:[%s651_s2] sm:$0xf] (!%p306_p7), %v456_v0 }
  0x56 PF: > { %v188_v1 = vld [vmem:[%s153_s22] sm:$0xff]  ;;  %v189_v2 = vld [vmem:[%s162_s29] sm:$0xff] }
  0x57   : > { %v190_v3 = vsub.f32 %v188_v1, %v189_v2  ;;  %v217_v4 = vrot.slane %v189_v2, 4  ;;  %v196_v5 = vmul.f32 %v189_v2, %v189_v2  ;;  %v216_v22 = vld [vmem:[%s651_s2 + $0x2] sm:$0x1]  ;;  %v225_v27 = vld [vmem:[%s651_s2 + $0x3] sm:$0x1] }
  0x58   : > { %v198_v32 = vld [vmem:[%s651_s2] sm:$0x1]  ;;  %v207_v33 = vld [vmem:[%s651_s2 + $0x1] sm:$0x1] }
  0x59   : > { %v191_v6 = vmul.f32 %v190_v3, %v190_v3  ;;  %v193_v7 = vand.u32 2147483647, %v190_v3  ;;  %v218_v8 = vadd.f32 %v217_v4, %v189_v2  ;;  %v226_v9 = vrot.slane %v196_v5, 4 }
  0x5b   : > { %v199_v10 = vrot.slane %v191_v6, 4  ;;  %v208_v11 = vrot.slane %v193_v7, 4  ;;  %v219_v12 = vrot.slane %v218_v8, 2  ;;  %v227_v13 = vadd.f32 %v226_v9, %v196_v5 }
  0x5d   : > { %v200_v14 = vadd.f32 %v199_v10, %v191_v6  ;;  %v209_v15 = vadd.f32 %v208_v11, %v193_v7  ;;  %v220_v16 = vadd.f32 %v219_v12, %v218_v8  ;;  %v228_v17 = vrot.slane %v227_v13, 2 }
  0x5f   : > { %v201_v18 = vrot.slane %v200_v14, 2  ;;  %v210_v19 = vrot.slane %v209_v15, 2  ;;  %v221_v20 = vrot.slane %v220_v16, 1  ;;  %v229_v21 = vadd.f32 %v228_v17, %v227_v13 }
  0x61   : > { %v202_v23 = vadd.f32 %v201_v18, %v200_v14  ;;  %v211_v24 = vadd.f32 %v210_v19, %v209_v15  ;;  %v222_v25 = vadd.f32 %v221_v20, %v220_v16  ;;  %v230_v26 = vrot.slane %v229_v21, 1 }
  0x63   : > { %v203_v28 = vrot.slane %v202_v23, 1  ;;  %v212_v29 = vrot.slane %v211_v24, 1  ;;  %v223_v30 = vadd.f32 %v222_v25, %v216_v22  ;;  %v231_v31 = vadd.f32 %v230_v26, %v229_v21 }
  0x65   : > { %v204_v34 = vadd.f32 %v203_v28, %v202_v23  ;;  %v213_v35 = vadd.f32 %v212_v29, %v211_v24  ;;  %224 = vst [vmem:[%s651_s2 + $0x2] sm:$0x1] %v223_v30  ;;  %v232_v36 = vadd.f32 %v231_v31, %v225_v27 }
  0x67   : > { %v205_v37 = vadd.f32 %v204_v34, %v198_v32  ;;  %v214_v38 = vadd.f32 %v213_v35, %v207_v33  ;;  %233 = vst [vmem:[%s651_s2 + $0x3] sm:$0x1] %v232_v36 }
  0x69   : > { %206 = vst [vmem:[%s651_s2] sm:$0x1] %v205_v37  ;;  %215 = vst [vmem:[%s651_s2 + $0x1] sm:$0x1] %v214_v38 }
  0x6a PF: > { %p15_p8 = scmp.ge.s32.totalorder %s492_s14, 4   ;;  %s660_s9 = smov %s444_s10 }
  0x6b   : > { %s661_s10 = smov %s448_s11  ;;  %s662_s11 = smov %s502_s17 }
  0x6c   : > { %s663_s12 = smov %s492_s14  ;;  %17 = sbr.rel (!%p15_p8) target bundleno = 5 (0x5), region = 81 }
  0x73   :  { %245 = vsyncpa [#allocation3], 1 }
  0x74   :  { %247 = vsyncpa [#allocation3 + $0x1], 1 }
  0x75   :  { %248 = vsyncpa [#allocation5], 1 }
  0x76   :  { %250 = vsyncpa [#allocation5 + $0x1], 1 }

</bundles_post_ra>
